<compile_context>
chip_gen: v7x
topology: tpu7x:2x2x1
jax: 0.10.0
libtpu: 0.0.40
codegen_flags: <defaults>
</compile_context>

<pallas_src>
import functools

import jax
import jax.numpy as jnp
from jax.experimental import pallas as pl
from jax.experimental.pallas import tpu as pltpu

BN_EPS = 1e-5


def _round_up(x, m):
    return (x + m - 1) // m * m


def _vaesurv_stage1_kernel(
    x1_ref, x2_ref, eps_ref,
    w1_ref, b1_ref,            # Cox-nnet encoder 1
    w2_ref, b2_ref,            # Cox-nnet encoder 2
    wz1_ref, wz2_ref, bz_ref,  # fused [z_mean || z_log_sigma] projection
    ws1_ref, bs1_ref,          # surv_net Linear(ls, ns) (lane-padded)
    s_ref,                     # output: pre-BN ReLU activation, (tm, ns_pad)
    *, ls_pad,
):
    f32 = jnp.float32

    # ---- two Cox-nnet encoders: Linear -> tanh (dropout p=0 -> identity).
    # x/w may be bf16; accumulation is forced to f32, tanh runs in f32. ----
    h1 = jnp.tanh(
        jnp.dot(x1_ref[...], w1_ref[...], preferred_element_type=f32) + b1_ref[...]
    )
    h2 = jnp.tanh(
        jnp.dot(x2_ref[...], w2_ref[...], preferred_element_type=f32) + b2_ref[...]
    )

    # ---- torch.cat((h1, h2), dim=1) followed by the two latent Linears is
    # computed as split matmuls against a single lane-concatenated weight:
    # columns [0, ls_pad) hold z_mean, columns [ls_pad, 2*ls_pad) hold
    # z_log_sigma.  One matmul pair instead of four tiny dots; the split is on
    # a 128-lane boundary. ----
    zc = (
        jnp.dot(h1, wz1_ref[...], preferred_element_type=f32)
        + jnp.dot(h2, wz2_ref[...], preferred_element_type=f32)
        + bz_ref[...]
    )
    z_mean = zc[:, :ls_pad]
    z_log_sigma = zc[:, ls_pad:]

    # ---- reparameterisation: z = mu + exp(0.5 * log_var) * eps ----
    z = z_mean + jnp.exp(0.5 * z_log_sigma) * eps_ref[...]

    # ---- surv_net stage 1: Linear -> ReLU.  Output is lane-padded to 128,
    # so the store is a full, unmasked vst.  BN + final 1-wide Linear run in
    # the wrapper (full-batch statistics, keeps this kernel batch-parallel). ----
    s_ref[...] = jnp.maximum(
        jnp.dot(z, ws1_ref[...], preferred_element_type=f32) + bs1_ref[...], 0.0
    )


@functools.partial(jax.jit, static_argnames=("block_m", "compute_dtype"))
def vaesurv_forward(x1, x2, eps, params, *, block_m=256,
                    compute_dtype=jnp.float32):
    """Full VAESurv forward: Pallas batch-tiled stage-1 + XLA BN/head epilogue."""
    f32 = jnp.float32
    batch, in1 = x1.shape
    in2 = x2.shape[1]
    d0 = params["w1"].shape[1]
    d1 = params["w2"].shape[1]
    ls = params["wzm1"].shape[1]
    ns = params["ws1"].shape[1]

    # Lane-pad the tiny latent / surv dims up to 128 so every kernel store and
    # vreg slice is lane-aligned (the extra lanes ride the MXU for free).
    ls_pad = _round_up(ls, 128)
    ns_pad = _round_up(ns, 128)

    def pad_cols(a, n):
        return jnp.pad(a, ((0, 0), (0, n - a.shape[1])))

    def pad_rows(a, n):
        return jnp.pad(a, ((0, n - a.shape[0]), (0, 0)))

    # Fused latent projection weights: [z_mean_pad || z_log_sigma_pad].
    wz1 = jnp.concatenate(
        [pad_cols(params["wzm1"], ls_pad), pad_cols(params["wzs1"], ls_pad)], axis=1)
    wz2 = jnp.concatenate(
        [pad_cols(params["wzm2"], ls_pad), pad_cols(params["wzs2"], ls_pad)], axis=1)
    bz = jnp.concatenate(
        [pad_cols(params["bzm"], ls_pad), pad_cols(params["bzs"], ls_pad)], axis=1)

    ws1 = jnp.pad(params["ws1"], ((0, ls_pad - ls), (0, ns_pad - ns)))
    bs1 = pad_cols(params["bs1"], ns_pad)

    # Batch tiling (multiple of 8 sublanes; block_m ~256-1024 for real sizes,
    # halve it on v7x which has only 64 MiB VMEM).
    bp0 = _round_up(batch, 8)
    tm = min(block_m, bp0)
    bp = _round_up(bp0, tm)

    x1_p = pad_rows(x1, bp).astype(compute_dtype)
    x2_p = pad_rows(x2, bp).astype(compute_dtype)
    eps_p = pad_rows(pad_cols(eps, ls_pad), bp)
    w1 = params["w1"].astype(compute_dtype)
    w2 = params["w2"].astype(compute_dtype)

    batch_map = lambda i: (i, 0)   # batch-tiled operands
    full_map = lambda i: (0, 0)    # weights: whole array resident across grid

    in_specs = [
        pl.BlockSpec((tm, in1), batch_map),        # x1 tile
        pl.BlockSpec((tm, in2), batch_map),        # x2 tile
        pl.BlockSpec((tm, ls_pad), batch_map),     # eps tile
        pl.BlockSpec((in1, d0), full_map),         # w1
        pl.BlockSpec((1, d0), full_map),           # b1
        pl.BlockSpec((in2, d1), full_map),         # w2
        pl.BlockSpec((1, d1), full_map),           # b2
        pl.BlockSpec((d0, 2 * ls_pad), full_map),  # wz1
        pl.BlockSpec((d1, 2 * ls_pad), full_map),  # wz2
        pl.BlockSpec((1, 2 * ls_pad), full_map),   # bz
        pl.BlockSpec((ls_pad, ns_pad), full_map),  # ws1
        pl.BlockSpec((1, ns_pad), full_map),       # bs1
    ]
    # TODO(synk): for very wide omics inputs, add a trailing "arbitrary"
    # contraction-axis grid dim with an f32 scratch accumulator for x@W.

    s_pad = pl.pallas_call(
        functools.partial(_vaesurv_stage1_kernel, ls_pad=ls_pad),
        out_shape=jax.ShapeDtypeStruct((bp, ns_pad), f32),
        grid=(bp // tm,),
        in_specs=in_specs,
        out_specs=pl.BlockSpec((tm, ns_pad), batch_map),
        compiler_params=pltpu.CompilerParams(
            dimension_semantics=("parallel",),        # megacore-shardable batch axis
            vmem_limit_bytes=48 * 1024 * 1024,        # explicit budget (v7x-safe)
        ),
    )(x1_p, x2_p, eps_p, w1, params["b1"], w2, params["b2"],
      wz1, wz2, bz, ws1, bs1)

    # ---- XLA epilogue: BatchNorm1d (train-mode, FULL-batch stats) -> Dropout
    # (p=0, identity) -> Linear(ns, 1, bias=False).  Tiny compute; doing it
    # here keeps stats exact under batch tiling and avoids a 1-lane-wide
    # kernel output. ----
    s = s_pad[:batch, :ns]
    mu = jnp.mean(s, axis=0, keepdims=True)
    var = jnp.mean((s - mu) * (s - mu), axis=0, keepdims=True)   # biased (PyTorch)
    s_bn = (s - mu) * jax.lax.rsqrt(var + BN_EPS) * params["gamma"] + params["beta"]
    return s_bn @ params["ws2"]


def make_params(key, in_1, in_2, d0, d1, ls, ns):
    """Deterministic synthetic parameters (PyTorch Linear W stored transposed)."""
    keys = jax.random.split(key, 12)
    n = functools.partial(jax.random.normal, dtype=jnp.float32)
    s = 0.1
    return {
        "w1": s * n(keys[0], (in_1, d0)),
        "b1": s * n(keys[1], (1, d0)),
        "w2": s * n(keys[2], (in_2, d1)),
        "b2": s * n(keys[3], (1, d1)),
        "wzm1": s * n(keys[4], (d0, ls)),
        "wzm2": s * n(keys[5], (d1, ls)),
        "bzm": s * n(keys[6], (1, ls)),
        "wzs1": s * n(keys[7], (d0, ls)),
        "wzs2": s * n(keys[8], (d1, ls)),
        "bzs": s * n(keys[9], (1, ls)),
        "ws1": s * n(keys[10], (ls, ns)),
        "bs1": jnp.zeros((1, ns), jnp.float32),
        "gamma": jnp.ones((1, ns), jnp.float32),
        "beta": jnp.zeros((1, ns), jnp.float32),
        "ws2": s * n(keys[11], (ns, 1)),
    }


def reference_forward(x1, x2, eps, p, compute_dtype=jnp.float32):
    """Pure-JAX reference mirroring the PyTorch forward semantics."""
    f32 = jnp.float32
    h1 = jnp.tanh(jnp.dot(x1.astype(compute_dtype), p["w1"].astype(compute_dtype),
                          preferred_element_type=f32) + p["b1"])
    h2 = jnp.tanh(jnp.dot(x2.astype(compute_dtype), p["w2"].astype(compute_dtype),
                          preferred_element_type=f32) + p["b2"])
    x = jnp.concatenate([h1, h2], axis=1)
    wzm = jnp.concatenate([p["wzm1"], p["wzm2"]], axis=0)
    wzs = jnp.concatenate([p["wzs1"], p["wzs2"]], axis=0)
    z_mean = x @ wzm + p["bzm"]
    z_log_sigma = x @ wzs + p["bzs"]
    z = z_mean + jnp.exp(0.5 * z_log_sigma) * eps
    s = jnp.maximum(z @ p["ws1"] + p["bs1"], 0.0)
    mu = jnp.mean(s, axis=0, keepdims=True)
    var = jnp.mean((s - mu) ** 2, axis=0, keepdims=True)
    s_bn = (s - mu) * jax.lax.rsqrt(var + BN_EPS) * p["gamma"] + p["beta"]
    return s_bn @ p["ws2"]


if __name__ == "__main__":
    # Small shapes consistent with the module: two omics inputs, hidden dims.
    B, IN1, IN2 = 8, 16, 12
    D0, D1 = 8, 8          # d_dims
    LS, NS = 8, 8          # latent dim, surv hidden dim

    key = jax.random.PRNGKey(0)
    k_x1, k_x2, k_eps, k_p = jax.random.split(key, 4)
    x1 = jax.random.normal(k_x1, (B, IN1), jnp.float32)
    x2 = jax.random.normal(k_x2, (B, IN2), jnp.float32)
    eps = jax.random.normal(k_eps, (B, LS), jnp.float32)  # VAE sampling noise
    params = make_params(k_p, IN1, IN2, D0, D1, LS, NS)

    # ---- f32 path (exact parity with the PyTorch-style reference) ----
    phi = vaesurv_forward(x1, x2, eps, params)
    jax.block_until_ready(phi)
    ref = reference_forward(x1, x2, eps, params)
    assert phi.shape == (B, 1)
    assert jnp.allclose(phi, ref, atol=1e-4, rtol=1e-4), (
        float(jnp.max(jnp.abs(phi - ref))))

    # ---- bf16 encoder-matmul path (v6e/v7x optimization); compared against a
    # reference that applies the same bf16 casts, so the check stays tight. ----
    phi_bf16 = vaesurv_forward(x1, x2, eps, params, compute_dtype=jnp.bfloat16)
    jax.block_until_ready(phi_bf16)
    ref_bf16 = reference_forward(x1, x2, eps, params, compute_dtype=jnp.bfloat16)
    assert jnp.allclose(phi_bf16, ref_bf16, atol=5e-3, rtol=5e-3), (
        float(jnp.max(jnp.abs(phi_bf16 - ref_bf16))))

    print("KERNEL_OK")
</pallas_src>

<mosaic_0001>
module attributes {stable_mosaic.version = 11 : i64} {
  func.func @_vaesurv_stage1_kernel(%arg0: i32, %arg1: memref<8x16xf32, #tpu.memory_space<vmem>>, %arg2: memref<8x12xf32, #tpu.memory_space<vmem>>, %arg3: memref<8x128xf32, #tpu.memory_space<vmem>>, %arg4: memref<16x8xf32, #tpu.memory_space<vmem>>, %arg5: memref<1x8xf32, #tpu.memory_space<vmem>>, %arg6: memref<12x8xf32, #tpu.memory_space<vmem>>, %arg7: memref<1x8xf32, #tpu.memory_space<vmem>>, %arg8: memref<8x256xf32, #tpu.memory_space<vmem>>, %arg9: memref<8x256xf32, #tpu.memory_space<vmem>>, %arg10: memref<1x256xf32, #tpu.memory_space<vmem>>, %arg11: memref<128x128xf32, #tpu.memory_space<vmem>>, %arg12: memref<1x128xf32, #tpu.memory_space<vmem>>, %arg13: memref<8x128xf32, #tpu.memory_space<vmem>>) attributes {dimension_semantics = [#tpu.dimension_semantics<parallel>], iteration_bounds = array<i64: 1>, scalar_prefetch = 0 : i64, scratch_operands = 0 : i64, tpu.core_type = #tpu.core_type<tc>, window_params = [{transform_indices = @transform_0, window_bounds = array<i64: 8, 16>}, {transform_indices = @transform_1, window_bounds = array<i64: 8, 12>}, {transform_indices = @transform_2, window_bounds = array<i64: 8, 128>}, {pipeline_mode = #tpu.pipeline_mode<synchronous>, transform_indices = @transform_3, window_bounds = array<i64: 16, 8>}, {pipeline_mode = #tpu.pipeline_mode<synchronous>, transform_indices = @transform_4, window_bounds = array<i64: 1, 8>}, {pipeline_mode = #tpu.pipeline_mode<synchronous>, transform_indices = @transform_5, window_bounds = array<i64: 12, 8>}, {pipeline_mode = #tpu.pipeline_mode<synchronous>, transform_indices = @transform_6, window_bounds = array<i64: 1, 8>}, {pipeline_mode = #tpu.pipeline_mode<synchronous>, transform_indices = @transform_7, window_bounds = array<i64: 8, 256>}, {pipeline_mode = #tpu.pipeline_mode<synchronous>, transform_indices = @transform_8, window_bounds = array<i64: 8, 256>}, {pipeline_mode = #tpu.pipeline_mode<synchronous>, transform_indices = @transform_9, window_bounds = array<i64: 1, 256>}, {pipeline_mode = #tpu.pipeline_mode<synchronous>, transform_indices = @transform_10, window_bounds = array<i64: 128, 128>}, {pipeline_mode = #tpu.pipeline_mode<synchronous>, transform_indices = @transform_11, window_bounds = array<i64: 1, 128>}, {transform_indices = @transform_12, window_bounds = array<i64: 8, 128>}]} {
    %c0 = arith.constant 0 : index
    %c0_0 = arith.constant 0 : index
    %0 = vector.load %arg1[%c0, %c0_0] : memref<8x16xf32, #tpu.memory_space<vmem>>, vector<8x16xf32>
    %c0_1 = arith.constant 0 : index
    %c0_2 = arith.constant 0 : index
    %1 = vector.load %arg4[%c0_1, %c0_2] : memref<16x8xf32, #tpu.memory_space<vmem>>, vector<16x8xf32>
    %cst = arith.constant dense<0.000000e+00> : vector<8x8xf32>
    %2 = tpu.matmul %0, %1, %cst {dimension_numbers = #tpu.dot_dimension_numbers<[1], [0], [0], [1], [0, 0, 1, 1], [], []>} : vector<8x16xf32>, vector<16x8xf32>, vector<8x8xf32> -> vector<8x8xf32>
    %c0_3 = arith.constant 0 : index
    %c0_4 = arith.constant 0 : index
    %3 = vector.load %arg5[%c0_3, %c0_4] : memref<1x8xf32, #tpu.memory_space<vmem>>, vector<1x8xf32>
    %4 = vector.broadcast %3 : vector<1x8xf32> to vector<8x8xf32>
    %5 = arith.addf %2, %4 : vector<8x8xf32>
    %6 = math.tanh %5 : vector<8x8xf32>
    %c0_5 = arith.constant 0 : index
    %c0_6 = arith.constant 0 : index
    %7 = vector.load %arg2[%c0_5, %c0_6] : memref<8x12xf32, #tpu.memory_space<vmem>>, vector<8x12xf32>
    %c0_7 = arith.constant 0 : index
    %c0_8 = arith.constant 0 : index
    %8 = vector.load %arg6[%c0_7, %c0_8] : memref<12x8xf32, #tpu.memory_space<vmem>>, vector<12x8xf32>
    %cst_9 = arith.constant dense<0.000000e+00> : vector<8x8xf32>
    %9 = tpu.matmul %7, %8, %cst_9 {dimension_numbers = #tpu.dot_dimension_numbers<[1], [0], [0], [1], [0, 0, 1, 1], [], []>} : vector<8x12xf32>, vector<12x8xf32>, vector<8x8xf32> -> vector<8x8xf32>
    %c0_10 = arith.constant 0 : index
    %c0_11 = arith.constant 0 : index
    %10 = vector.load %arg7[%c0_10, %c0_11] : memref<1x8xf32, #tpu.memory_space<vmem>>, vector<1x8xf32>
    %11 = vector.broadcast %10 : vector<1x8xf32> to vector<8x8xf32>
    %12 = arith.addf %9, %11 : vector<8x8xf32>
    %13 = math.tanh %12 : vector<8x8xf32>
    %c0_12 = arith.constant 0 : index
    %c0_13 = arith.constant 0 : index
    %14 = vector.load %arg8[%c0_12, %c0_13] : memref<8x256xf32, #tpu.memory_space<vmem>>, vector<8x256xf32>
    %cst_14 = arith.constant dense<0.000000e+00> : vector<8x256xf32>
    %15 = tpu.matmul %6, %14, %cst_14 {dimension_numbers = #tpu.dot_dimension_numbers<[1], [0], [0], [1], [0, 0, 1, 1], [], []>} : vector<8x8xf32>, vector<8x256xf32>, vector<8x256xf32> -> vector<8x256xf32>
    %c0_15 = arith.constant 0 : index
    %c0_16 = arith.constant 0 : index
    %16 = vector.load %arg9[%c0_15, %c0_16] : memref<8x256xf32, #tpu.memory_space<vmem>>, vector<8x256xf32>
    %cst_17 = arith.constant dense<0.000000e+00> : vector<8x256xf32>
    %17 = tpu.matmul %13, %16, %cst_17 {dimension_numbers = #tpu.dot_dimension_numbers<[1], [0], [0], [1], [0, 0, 1, 1], [], []>} : vector<8x8xf32>, vector<8x256xf32>, vector<8x256xf32> -> vector<8x256xf32>
    %18 = arith.addf %15, %17 : vector<8x256xf32>
    %c0_18 = arith.constant 0 : index
    %c0_19 = arith.constant 0 : index
    %19 = vector.load %arg10[%c0_18, %c0_19] : memref<1x256xf32, #tpu.memory_space<vmem>>, vector<1x256xf32>
    %20 = vector.broadcast %19 : vector<1x256xf32> to vector<8x256xf32>
    %21 = arith.addf %18, %20 : vector<8x256xf32>
    %22 = vector.extract_strided_slice %21 {offsets = [0, 0], sizes = [8, 128], strides = [1, 1]} : vector<8x256xf32> to vector<8x128xf32>
    %23 = vector.extract_strided_slice %21 {offsets = [0, 128], sizes = [8, 128], strides = [1, 1]} : vector<8x256xf32> to vector<8x128xf32>
    %cst_20 = arith.constant 5.000000e-01 : f32
    %24 = vector.broadcast %cst_20 : f32 to vector<8x128xf32>
    %25 = arith.mulf %24, %23 : vector<8x128xf32>
    %26 = math.exp %25 : vector<8x128xf32>
    %c0_21 = arith.constant 0 : index
    %c0_22 = arith.constant 0 : index
    %27 = vector.load %arg3[%c0_21, %c0_22] : memref<8x128xf32, #tpu.memory_space<vmem>>, vector<8x128xf32>
    %28 = arith.mulf %26, %27 : vector<8x128xf32>
    %29 = arith.addf %22, %28 : vector<8x128xf32>
    %c0_23 = arith.constant 0 : index
    %c0_24 = arith.constant 0 : index
    %30 = vector.load %arg11[%c0_23, %c0_24] : memref<128x128xf32, #tpu.memory_space<vmem>>, vector<128x128xf32>
    %cst_25 = arith.constant dense<0.000000e+00> : vector<8x128xf32>
    %31 = tpu.matmul %29, %30, %cst_25 {dimension_numbers = #tpu.dot_dimension_numbers<[1], [0], [0], [1], [0, 0, 1, 1], [], []>} : vector<8x128xf32>, vector<128x128xf32>, vector<8x128xf32> -> vector<8x128xf32>
    %c0_26 = arith.constant 0 : index
    %c0_27 = arith.constant 0 : index
    %32 = vector.load %arg12[%c0_26, %c0_27] : memref<1x128xf32, #tpu.memory_space<vmem>>, vector<1x128xf32>
    %33 = vector.broadcast %32 : vector<1x128xf32> to vector<8x128xf32>
    %34 = arith.addf %31, %33 : vector<8x128xf32>
    %cst_28 = arith.constant 0.000000e+00 : f32
    %35 = vector.broadcast %cst_28 : f32 to vector<8x128xf32>
    %36 = arith.maximumf %34, %35 : vector<8x128xf32>
    %c0_29 = arith.constant 0 : index
    %c0_30 = arith.constant 0 : index
    %37 = vector.load %arg13[%c0_29, %c0_30] : memref<8x128xf32, #tpu.memory_space<vmem>>, vector<8x128xf32>
    tpu.vector_store %arg13[%c0_29, %c0_30], %36 {strides = array<i32>} : memref<8x128xf32, #tpu.memory_space<vmem>>, vector<8x128xf32>,
    return
  }
  func.func @transform_0(%arg0: i32) -> (i32, i32) {
    %c0_i32 = arith.constant 0 : i32
    %c0_i32_0 = arith.constant 0 : i32
    return %arg0, %c0_i32 : i32, i32
  }
  func.func @transform_1(%arg0: i32) -> (i32, i32) {
    %c0_i32 = arith.constant 0 : i32
    %c0_i32_0 = arith.constant 0 : i32
    return %arg0, %c0_i32 : i32, i32
  }
  func.func @transform_2(%arg0: i32) -> (i32, i32) {
    %c0_i32 = arith.constant 0 : i32
    %c0_i32_0 = arith.constant 0 : i32
    return %arg0, %c0_i32 : i32, i32
  }
  func.func @transform_3(%arg0: i32) -> (i32, i32) {
    %c0_i32 = arith.constant 0 : i32
    %c0_i32_0 = arith.constant 0 : i32
    %c0_i32_1 = arith.constant 0 : i32
    return %c0_i32, %c0_i32_0 : i32, i32
  }
  func.func @transform_4(%arg0: i32) -> (i32, i32) {
    %c0_i32 = arith.constant 0 : i32
    %c0_i32_0 = arith.constant 0 : i32
    %c0_i32_1 = arith.constant 0 : i32
    return %c0_i32, %c0_i32_0 : i32, i32
  }
  func.func @transform_5(%arg0: i32) -> (i32, i32) {
    %c0_i32 = arith.constant 0 : i32
    %c0_i32_0 = arith.constant 0 : i32
    %c0_i32_1 = arith.constant 0 : i32
    return %c0_i32, %c0_i32_0 : i32, i32
  }
  func.func @transform_6(%arg0: i32) -> (i32, i32) {
    %c0_i32 = arith.constant 0 : i32
    %c0_i32_0 = arith.constant 0 : i32
    %c0_i32_1 = arith.constant 0 : i32
    return %c0_i32, %c0_i32_0 : i32, i32
  }
  func.func @transform_7(%arg0: i32) -> (i32, i32) {
    %c0_i32 = arith.constant 0 : i32
    %c0_i32_0 = arith.constant 0 : i32
    %c0_i32_1 = arith.constant 0 : i32
    return %c0_i32, %c0_i32_0 : i32, i32
  }
  func.func @transform_8(%arg0: i32) -> (i32, i32) {
    %c0_i32 = arith.constant 0 : i32
    %c0_i32_0 = arith.constant 0 : i32
    %c0_i32_1 = arith.constant 0 : i32
    return %c0_i32, %c0_i32_0 : i32, i32
  }
  func.func @transform_9(%arg0: i32) -> (i32, i32) {
    %c0_i32 = arith.constant 0 : i32
    %c0_i32_0 = arith.constant 0 : i32
    %c0_i32_1 = arith.constant 0 : i32
    return %c0_i32, %c0_i32_0 : i32, i32
  }
  func.func @transform_10(%arg0: i32) -> (i32, i32) {
    %c0_i32 = arith.constant 0 : i32
    %c0_i32_0 = arith.constant 0 : i32
    %c0_i32_1 = arith.constant 0 : i32
    return %c0_i32, %c0_i32_0 : i32, i32
  }
  func.func @transform_11(%arg0: i32) -> (i32, i32) {
    %c0_i32 = arith.constant 0 : i32
    %c0_i32_0 = arith.constant 0 : i32
    %c0_i32_1 = arith.constant 0 : i32
    return %c0_i32, %c0_i32_0 : i32, i32
  }
  func.func @transform_12(%arg0: i32) -> (i32, i32) {
    %c0_i32 = arith.constant 0 : i32
    %c0_i32_0 = arith.constant 0 : i32
    return %arg0, %c0_i32 : i32, i32
  }
}

</mosaic_0001>

<bundles_post_ra>
// kernel: vaesurv_forward.1
= control target key start
LH: loop header
LB: loop body
LE: loop exit
PB: predicated region body
PF: predicated region fallthrough
CT: control target
= control target key end

     0   :  { %v610_v0 = vmov 0.0|0.0   ;;  %vm611_vm0 = vmmov 0   ;;  %v612_v3 = vmov 0.0   ;;  %vm140_vm1 = vcmask 1043456   ;;  %s788_s3 = inlined_call_operand.vmem [shape: f32[16,8], index: 3, kind: input, shape index: {}]   ;;  %s789_s5 = inlined_call_operand.vmem [shape: f32[12,8], index: 5, kind: input, shape index: {}]   ;;  %s790_s0 = inlined_call_operand.vmem [shape: f32[8,16], index: 0, kind: input, shape index: {}]   ;;  %s791_s1 = inlined_call_operand.vmem [shape: f32[8,12], index: 1, kind: input, shape index: {}]   ;;  %s792_s8 = inlined_call_operand.vmem [shape: f32[8,256], index: 8, kind: input, shape index: {}]   ;;  %s793_s7 = inlined_call_operand.vmem [shape: f32[8,256], index: 7, kind: input, shape index: {}]   ;;  %s794_s10 = inlined_call_operand.vmem [shape: f32[128,128], index: 10, kind: input, shape index: {}]   ;;  %s795_s6 = inlined_call_operand.vmem [shape: f32[1,8], index: 6, kind: input, shape index: {}]   ;;  %s796_s4 = inlined_call_operand.vmem [shape: f32[1,8], index: 4, kind: input, shape index: {}]   ;;  %s797_s9 = inlined_call_operand.vmem [shape: f32[1,256], index: 9, kind: input, shape index: {}]   ;;  %s798_s2 = inlined_call_operand.vmem [shape: f32[8,128], index: 2, kind: input, shape index: {}]   ;;  %s799_s11 = inlined_call_operand.vmem [shape: f32[1,128], index: 11, kind: input, shape index: {}]   ;;  %s800_s12 = inlined_call_operand.vmem [shape: f32[8,128], index: 12, kind: output, shape index: {}]  }
   0x1   :  { %567 = vmatprep.subr.bf16.mxu0 %v610_v0  ;;  %v42_v1 = vld [vmem:[%s788_s3] sm:$0xff]  ;;  %v43_v2 = vld [vmem:[%s788_s3 + $0x8] sm:$0xff]  ;;  %522 = vmatprep.mubr.msk.f32.mxu0 %vm611_vm0, %v612_v3  ;;  %vm51_vm2 = vcmask 130048   ;;  %vm613_vm3 = vmmov 1   ;;  %vm136_vm5 = vcmask 97280   ;;  %v390_v15 = vld [vmem:[%s794_s10 + $0x10] sm:$0xff]  ;;  %v370_v48 = vlaneseq }
   0x2   :  { %v568_v4 = vpack.c.bf16 %v43_v2, %v42_v1  ;;  %v127_v5 = vld [vmem:[%s789_s5] sm:$0xff]  ;;  %v128_v6 = vld [vmem:[%s789_s5 + $0x8] sm:$0xf]  ;;  %574 = vmatprep.subr.bf16.mxu1 %v610_v0  ;;  %564 = vmatprep.mubr.msk.f32.mxu1 %vm611_vm0, %v612_v3  ;;  %vm572_vm4 = vmpackc.low %vm140_vm1, %vm613_vm3  ;;  %vm219_vm6 = vcmask 64512  }
   0x3   :  { %v41_v7 = vld [vmem:[%s790_s0] sm:$0xff]  ;;  %v571_v8 = vpack.c.bf16 %v128_v6, %v127_v5  ;;  %v218_v10 = vld [vmem:[%s792_s8 + $0x8] sm:$0xff]  ;;  %v391_v17 = vld [vmem:[%s794_s10 + $0x18] sm:$0xff]  ;;  %v371_v49 = vshrl.u32 %v370_v48, 7 }
   0x4   :  { %569 = vmatpush3.bf16.msra.mxu0 %v568_v4  ;;  %v126_v9 = vld [vmem:[%s791_s1] sm:$0xff]  ;;  %v216_v12 = vld [vmem:[%s793_s7 + $0x8] sm:$0xff]  ;;  %v578_v18 = vpack.c.bf16 %v391_v17, %v390_v15  ;;  %v394_v33 = vld [vmem:[%s794_s10 + $0x30] sm:$0xff] }
   0x5   :  { %570 = vmatprep.subr.bf16.mxu0 %v610_v0  ;;  %v217_v11 = vld [vmem:[%s792_s8] sm:$0xff]  ;;  %v389_v14 = vld [vmem:[%s794_s10 + $0x8] sm:$0xff]  ;;  %v395_v34 = vld [vmem:[%s794_s10 + $0x38] sm:$0xff]  ;;  %v376_v50 = vsub.s32 1, %v371_v49  ;;  %v372_v58 = vsub.s32 0, %v371_v49 }
   0x6   :  { %v388_v13 = vld [vmem:[%s794_s10] sm:$0xff]  ;;  %v393_v31 = vld [vmem:[%s794_s10 + $0x28] sm:$0xff]  ;;  %v584_v35 = vpack.c.bf16 %v395_v34, %v394_v33  ;;  %v398_v39 = vld [vmem:[%s794_s10 + $0x50] sm:$0xff] }
   0x7   :  { %523 = vmatmul.mubr.msk.f32.vlgmr.msra.gmra.mrb[0].mxu0 %vm51_vm2, %v41_v7  ;;  %v575_v16 = vpack.c.bf16 %v389_v14, %v388_v13  ;;  %v489_v21 = vld [vmem:[%s795_s6] ss:$0 sm:$0xff]  ;;  %v397_v37 = vld [vmem:[%s794_s10 + $0x48] sm:$0xff]  ;;  %v399_v40 = vld [vmem:[%s794_s10 + $0x58] sm:$0xff] }
   0x8   :  { %573 = vmatpush3.bf16.msk.msra.mxu0 %vm572_vm4, %v571_v8  ;;  %529 = vmatprep.mubr.msk.f32.mxu0 %vm611_vm0, %v612_v3  ;;  %v487_v25 = vld [vmem:[%s796_s4] ss:$0 sm:$0xff]  ;;  %v590_v41 = vpack.c.bf16 %v399_v40, %v398_v39  ;;  %v401_v43 = vld [vmem:[%s794_s10 + $0x68] sm:$0xff]  ;;  %v402_v45 = vld [vmem:[%s794_s10 + $0x70] sm:$0xff] }
   0x9   :  { %223 = vmatprep.subr.mxu0 %v218_v10  ;;  %576 = vmatpush3.bf16.msra.mxu1 %v575_v16  ;;  %v215_v27 = vld [vmem:[%s793_s7] sm:$0xff]  ;;  %v403_v46 = vld [vmem:[%s794_s10 + $0x78] sm:$0xff] }
   0xa   :  { %577 = vmatprep.subr.bf16.mxu1 %v610_v0  ;;  %v392_v30 = vld [vmem:[%s794_s10 + $0x20] sm:$0xff]  ;;  %v596_v47 = vpack.c.bf16 %v403_v46, %v402_v45 }
   0xb   :  { %530 = vmatmul.mubr.msk.f32.vlgmr.msra.gmra.mrb[2].mxu0 %vm136_vm5, %v126_v9  ;;  %v581_v32 = vpack.c.bf16 %v393_v31, %v392_v30  ;;  %v396_v36 = vld [vmem:[%s794_s10 + $0x40] sm:$0xff] }
   0xc   :  { %287 = vmatprep.mubr.f32.mxu0 %v612_v3  ;;  %224 = vmatpush1.msra.mxu0 %v217_v11  ;;  %v587_v38 = vpack.c.bf16 %v397_v37, %v396_v36  ;;  %v400_v42 = vld [vmem:[%s794_s10 + $0x60] sm:$0xff] }
   0xd   :  { %297 = vmatprep.subr.mxu0 %v216_v12  ;;  %579 = vmatpush3.bf16.msra.mxu1 %v578_v18  ;;  %v593_v44 = vpack.c.bf16 %v401_v43, %v400_v42  ;;  %v368_v51 = vld [vmem:[%s797_s9] sm:$0x3] }
   0xe   :  { %580 = vmatprep.subr.bf16.mxu1 %v610_v0  ;;  %v377_v52 = vrot.slane %v368_v51, %v376_v50  ;;  %v373_v59 = vrot.slane %v368_v51, %v372_v58  ;;  %v385_v60 = vld [vmem:[%s798_s2] sm:$0xff] }
   0xf   :  { %v494_v1 = vld [vmem:[%s799_s11] ss:$0 sm:$0xff] }
  0x11   :  { %582 = vmatpush3.bf16.msra.mxu1 %v581_v32 }
  0x12   :  { %583 = vmatprep.subr.bf16.mxu1 %v610_v0 }
  0x15   :  { %585 = vmatpush3.bf16.msra.mxu1 %v584_v35 }
  0x16   :  { %586 = vmatprep.subr.bf16.mxu1 %v610_v0 }
  0x19   :  { %588 = vmatpush3.bf16.msra.mxu1 %v587_v38 }
  0x1a   :  { %589 = vmatprep.subr.bf16.mxu1 %v610_v0 }
  0x1d   :  { %591 = vmatpush3.bf16.msra.mxu1 %v590_v41 }
  0x1e   :  { %592 = vmatprep.subr.bf16.mxu1 %v610_v0 }
  0x21   :  { %594 = vmatpush3.bf16.msra.mxu1 %v593_v44 }
  0x22   :  { %595 = vmatprep.subr.bf16.mxu1 %v610_v0 }
  0x25   :  { %597 = vmatpush3.bf16.msra.mxu1 %v596_v47 }
  0xda   :  { %v121_v19 = vpop.f32.mrb[0].mxu0 }
  0xdb   :  { %v524_v20 = vpop.f32.mrb[1].mxu0  ;;  %v122_v26 = vadd.f32 %v487_v25, %v121_v19 }
  0xde   :  { %v210_v22 = vpop.f32.mrb[2].mxu0 }
  0xdf   :  { %v211_v23 = vadd.f32 %v489_v21, %v210_v22  ;;  %v531_v24 = vpop.f32.mrb[3].mxu0 }
  0xe1   :  { %604 = vtanh.f32 %v211_v23 }
  0xe2   :  { %606 = vtanh.f32 %v122_v26 }
  0xeb   :  { %v605_v28 = vpop.eup %604 }
  0xec   :  { %492 = vmatmul.mubr.msk.f32.vlgmr.msra.gmra.mrb[4].mxu0 %vm219_vm6, %v605_v28  ;;  %v607_v29 = vpop.eup %606 }
  0xed   :  { %298 = vmatpush1.msra.mxu0 %v215_v27  ;;  %361 = vmatprep.mubr.f32.mxu0 %v612_v3 }
  0xf4   :  { %493 = vmatmul.mubr.msk.f32.vlgmr.msra.gmra.mrb[4].mxu0 %vm219_vm6, %v607_v29 }
 0x1c7   :  { %v363_v53 = vpop.f32.mrb[4].mxu0 }
 0x1c8   :  { %v365_v54 = vpop.f32.mrb[5].mxu0  ;;  %v380_v62 = vadd.f32 %v373_v59, %v363_v53 }
 0x1c9   :  { %v381_v55 = vadd.f32 %v377_v52, %v365_v54 }
 0x1cb   :  { %v382_v56 = vmul.f32 0.5, %v381_v55 }
 0x1cd   :  { %v383_v57 = vmul.f32 1.442695, %v382_v56 }
 0x1cf   :  { %608 = vpow2.f32 %v383_v57 }
 0x1d9   :  { %v609_v61 = vpop.eup %608 }
 0x1da   :  { %v386_v63 = vmul.f32 %v609_v61, %v385_v60 }
 0x1dc   :  { %v387_v0 = vadd.f32 %v386_v63, %v380_v62 }
 0x1de   :  { %565 = vmatmul.mubr.f32.vlgmr.msra.gmra.mrb[0].mxu1 %v387_v0 }
 0x2b1   :  { %v477_v2 = vpop.f32.mrb[0].mxu1 }
 0x2b2   :  { %v478_v3 = vadd.f32 %v494_v1, %v477_v2  ;;  %v566_v4 = vpop.f32.mrb[1].mxu1 }
 0x2b4   :  { %v481_v5 = vmax.f32 %v478_v3, 0.0 }
 0x2b6   :  { %482 = vst [vmem:[%s800_s12] sm:$0xff] %v481_v5 }

</bundles_post_ra>
